<compile_context>
chip_gen: v6e
topology: v6e:2x2x1
jax: 0.10.0
libtpu: 0.0.40
codegen_flags: <defaults>
</compile_context>

<pallas_src>
import jax
import jax.numpy as jnp
from jax.experimental import pallas as pl
from jax.experimental.pallas import tpu as pltpu


def _round_up(x, m):
    return ((x + m - 1) // m) * m


def _pad_to(x, shape):
    pads = [(0, t - s) for s, t in zip(x.shape, shape)]
    return jnp.pad(x, pads)


def worker_kr_dqn_kernel(state_ref, sym_flag_ref,
                         w1_ref, b1_ref,
                         w2_ref, b2_ref,
                         w3_ref, b3_ref,
                         sym_dise_ref,
                         out_ref):
    # Matmuls: bf16 operands, f32 accumulation (MXU).  Elementwise chain: f32.
    x = state_ref[...]                                               # (TB, IN_P) bf16

    h1 = jnp.dot(x, w1_ref[...], preferred_element_type=jnp.float32) + b1_ref[...]
    h1 = jnp.maximum(h1, 0.0)                                        # relu(fc1), f32

    h2 = jnp.dot(h1.astype(jnp.bfloat16), w2_ref[...],
                 preferred_element_type=jnp.float32) + b2_ref[...]
    h2 = jnp.maximum(h2, 0.0)                                        # relu(fc2), f32

    logits = jnp.dot(h2.astype(jnp.bfloat16), w3_ref[...],
                     preferred_element_type=jnp.float32) + b3_ref[...]

    # sigmoid(x) = 1 / (1 + exp(-x)): exp + reciprocal both go to the EUP slot.
    sig = pl.reciprocal(1.0 + jnp.exp(-logits), approx=True)
    q = sig + sym_dise_ref[...]                                      # + sym_dise_mat
    out_ref[...] = q * sym_flag_ref[...]                             # mask by sym_flag


def worker_kr_dqn_forward(state, sym_flag, params, *, batch_tile=512):
    """params = dict(w1, b1, w2, b2, w3, b3, sym_dise_mat); weights are (in, out)."""
    batch, input_shape = state.shape
    hidden = params["w1"].shape[1]
    num_actions = params["w3"].shape[1]

    # Lane-pad every feature dim to a multiple of 128 (full MXU / vreg tiles,
    # unmasked output stores).  Zero padding contributes nothing to the
    # un-padded slice of the result.
    in_p = _round_up(input_shape, 128)
    hid_p = _round_up(hidden, 128)
    act_p = _round_up(num_actions, 128)

    # Batch tiling: TB rows per grid step (sublane-aligned), weights resident.
    tb = min(batch_tile, _round_up(batch, 8))
    batch_p = _round_up(batch, tb)
    grid = (batch_p // tb,)

    state_p = _pad_to(state, (batch_p, in_p)).astype(jnp.bfloat16)
    flag_p = _pad_to(sym_flag, (batch_p, act_p)).astype(jnp.float32)
    w1 = _pad_to(params["w1"], (in_p, hid_p)).astype(jnp.bfloat16)
    b1 = _pad_to(params["b1"], (1, hid_p)).astype(jnp.float32)
    w2 = _pad_to(params["w2"], (hid_p, hid_p)).astype(jnp.bfloat16)
    b2 = _pad_to(params["b2"], (1, hid_p)).astype(jnp.float32)
    w3 = _pad_to(params["w3"], (hid_p, act_p)).astype(jnp.bfloat16)
    b3 = _pad_to(params["b3"], (1, act_p)).astype(jnp.float32)
    sym_dise = _pad_to(params["sym_dise_mat"], (1, act_p)).astype(jnp.float32)

    def tiled(shape):      # streamed along the batch grid axis
        return pl.BlockSpec(shape, lambda i: (i, 0))

    def resident(shape):   # same block every grid step -> stays in VMEM
        return pl.BlockSpec(shape, lambda i: (0, 0))

    out_p = pl.pallas_call(
        worker_kr_dqn_kernel,
        out_shape=jax.ShapeDtypeStruct((batch_p, act_p), jnp.float32),
        grid=grid,
        in_specs=[
            tiled((tb, in_p)),        # state
            tiled((tb, act_p)),       # sym_flag
            resident((in_p, hid_p)),  # w1
            resident((1, hid_p)),     # b1
            resident((hid_p, hid_p)), # w2
            resident((1, hid_p)),     # b2
            resident((hid_p, act_p)), # w3
            resident((1, act_p)),     # b3
            resident((1, act_p)),     # sym_dise_mat
        ],
        out_specs=tiled((tb, act_p)),
        compiler_params=pltpu.CompilerParams(
            dimension_semantics=("parallel",)),   # 2x on v7x megacore; no-op v5e/v6e
    )(state_p, flag_p, w1, b1, w2, b2, w3, b3, sym_dise)

    return out_p[:batch, :num_actions]


def init_params(key, input_shape, hidden_size, num_actions):
    """Deterministic synthetic initialization (uniform, PyTorch-Linear-style bounds)."""
    keys = jax.random.split(key, 7)

    def linear(kw, kb, fan_in, fan_out):
        bound = 1.0 / jnp.sqrt(jnp.float32(fan_in))
        w = jax.random.uniform(kw, (fan_in, fan_out), jnp.float32, -bound, bound)
        b = jax.random.uniform(kb, (1, fan_out), jnp.float32, -bound, bound)
        return w, b

    w1, b1 = linear(keys[0], keys[1], input_shape, hidden_size)
    w2, b2 = linear(keys[2], keys[3], hidden_size, hidden_size)
    w3, b3 = linear(keys[4], keys[5], hidden_size, num_actions)
    # sym_dise_pro reshaped to (1, num_actions) in the module's __init__
    sym_dise_mat = jax.random.uniform(keys[6], (1, num_actions), jnp.float32, 0.0, 1.0)

    return dict(w1=w1, b1=b1, w2=w2, b2=b2, w3=w3, b3=b3, sym_dise_mat=sym_dise_mat)


def reference_forward(state, sym_flag, p):
    """Pure-JAX reference mirroring the kernel's bf16 matmul operands / f32 accumulate."""
    def mm(a, w):
        return jnp.dot(a.astype(jnp.bfloat16), w.astype(jnp.bfloat16),
                       preferred_element_type=jnp.float32)

    x = jax.nn.relu(mm(state, p["w1"]) + p["b1"])
    x = jax.nn.relu(mm(x, p["w2"]) + p["b2"])
    x = mm(x, p["w3"]) + p["b3"]
    x = jax.nn.sigmoid(x) + p["sym_dise_mat"]
    return x * sym_flag


if __name__ == "__main__":
    # Small shapes consistent with the module: flat state vector in, Q-values out.
    batch = 4
    input_shape = 32
    hidden_size = 32
    num_actions = 16

    key = jax.random.PRNGKey(0)
    k_params, k_state, k_flag = jax.random.split(key, 3)

    params = init_params(k_params, input_shape, hidden_size, num_actions)
    state = jax.random.normal(k_state, (batch, input_shape), jnp.float32)
    # sym_flag is a 0/1 mask over actions (per batch element)
    sym_flag = (jax.random.uniform(k_flag, (batch, num_actions)) > 0.3).astype(jnp.float32)

    out = worker_kr_dqn_forward(state, sym_flag, params)
    out = jax.block_until_ready(out)

    ref = reference_forward(state, sym_flag, params)
    assert out.shape == (batch, num_actions)
    # bf16 matmul operands + approx-EUP reciprocal => small deviation vs reference.
    assert jnp.allclose(out, ref, atol=2e-2, rtol=2e-2), "mismatch vs reference"

    print("KERNEL_OK")
</pallas_src>

<mosaic_0001>
module attributes {stable_mosaic.version = 11 : i64} {
  func.func @worker_kr_dqn_kernel(%arg0: i32, %arg1: memref<8x128xbf16, #tpu.memory_space<vmem>>, %arg2: memref<8x128xf32, #tpu.memory_space<vmem>>, %arg3: memref<128x128xbf16, #tpu.memory_space<vmem>>, %arg4: memref<1x128xf32, #tpu.memory_space<vmem>>, %arg5: memref<128x128xbf16, #tpu.memory_space<vmem>>, %arg6: memref<1x128xf32, #tpu.memory_space<vmem>>, %arg7: memref<128x128xbf16, #tpu.memory_space<vmem>>, %arg8: memref<1x128xf32, #tpu.memory_space<vmem>>, %arg9: memref<1x128xf32, #tpu.memory_space<vmem>>, %arg10: memref<8x128xf32, #tpu.memory_space<vmem>>) attributes {dimension_semantics = [#tpu.dimension_semantics<parallel>], iteration_bounds = array<i64: 1>, scalar_prefetch = 0 : i64, scratch_operands = 0 : i64, tpu.core_type = #tpu.core_type<tc>, window_params = [{transform_indices = @transform_0, window_bounds = array<i64: 8, 128>}, {transform_indices = @transform_1, window_bounds = array<i64: 8, 128>}, {pipeline_mode = #tpu.pipeline_mode<synchronous>, transform_indices = @transform_2, window_bounds = array<i64: 128, 128>}, {pipeline_mode = #tpu.pipeline_mode<synchronous>, transform_indices = @transform_3, window_bounds = array<i64: 1, 128>}, {pipeline_mode = #tpu.pipeline_mode<synchronous>, transform_indices = @transform_4, window_bounds = array<i64: 128, 128>}, {pipeline_mode = #tpu.pipeline_mode<synchronous>, transform_indices = @transform_5, window_bounds = array<i64: 1, 128>}, {pipeline_mode = #tpu.pipeline_mode<synchronous>, transform_indices = @transform_6, window_bounds = array<i64: 128, 128>}, {pipeline_mode = #tpu.pipeline_mode<synchronous>, transform_indices = @transform_7, window_bounds = array<i64: 1, 128>}, {pipeline_mode = #tpu.pipeline_mode<synchronous>, transform_indices = @transform_8, window_bounds = array<i64: 1, 128>}, {transform_indices = @transform_9, window_bounds = array<i64: 8, 128>}]} {
    %c0 = arith.constant 0 : index
    %c0_0 = arith.constant 0 : index
    %0 = vector.load %arg1[%c0, %c0_0] : memref<8x128xbf16, #tpu.memory_space<vmem>>, vector<8x128xbf16>
    %c0_1 = arith.constant 0 : index
    %c0_2 = arith.constant 0 : index
    %1 = vector.load %arg3[%c0_1, %c0_2] : memref<128x128xbf16, #tpu.memory_space<vmem>>, vector<128x128xbf16>
    %cst = arith.constant dense<0.000000e+00> : vector<8x128xf32>
    %2 = tpu.matmul %0, %1, %cst {dimension_numbers = #tpu.dot_dimension_numbers<[1], [0], [0], [1], [0, 0, 1, 1], [], []>} : vector<8x128xbf16>, vector<128x128xbf16>, vector<8x128xf32> -> vector<8x128xf32>
    %c0_3 = arith.constant 0 : index
    %c0_4 = arith.constant 0 : index
    %3 = vector.load %arg4[%c0_3, %c0_4] : memref<1x128xf32, #tpu.memory_space<vmem>>, vector<1x128xf32>
    %4 = vector.broadcast %3 : vector<1x128xf32> to vector<8x128xf32>
    %5 = arith.addf %2, %4 : vector<8x128xf32>
    %cst_5 = arith.constant 0.000000e+00 : f32
    %6 = vector.broadcast %cst_5 : f32 to vector<8x128xf32>
    %7 = arith.maximumf %5, %6 : vector<8x128xf32>
    %8 = arith.truncf %7 : vector<8x128xf32> to vector<8x128xbf16>
    %c0_6 = arith.constant 0 : index
    %c0_7 = arith.constant 0 : index
    %9 = vector.load %arg5[%c0_6, %c0_7] : memref<128x128xbf16, #tpu.memory_space<vmem>>, vector<128x128xbf16>
    %cst_8 = arith.constant dense<0.000000e+00> : vector<8x128xf32>
    %10 = tpu.matmul %8, %9, %cst_8 {dimension_numbers = #tpu.dot_dimension_numbers<[1], [0], [0], [1], [0, 0, 1, 1], [], []>} : vector<8x128xbf16>, vector<128x128xbf16>, vector<8x128xf32> -> vector<8x128xf32>
    %c0_9 = arith.constant 0 : index
    %c0_10 = arith.constant 0 : index
    %11 = vector.load %arg6[%c0_9, %c0_10] : memref<1x128xf32, #tpu.memory_space<vmem>>, vector<1x128xf32>
    %12 = vector.broadcast %11 : vector<1x128xf32> to vector<8x128xf32>
    %13 = arith.addf %10, %12 : vector<8x128xf32>
    %cst_11 = arith.constant 0.000000e+00 : f32
    %14 = vector.broadcast %cst_11 : f32 to vector<8x128xf32>
    %15 = arith.maximumf %13, %14 : vector<8x128xf32>
    %16 = arith.truncf %15 : vector<8x128xf32> to vector<8x128xbf16>
    %c0_12 = arith.constant 0 : index
    %c0_13 = arith.constant 0 : index
    %17 = vector.load %arg7[%c0_12, %c0_13] : memref<128x128xbf16, #tpu.memory_space<vmem>>, vector<128x128xbf16>
    %cst_14 = arith.constant dense<0.000000e+00> : vector<8x128xf32>
    %18 = tpu.matmul %16, %17, %cst_14 {dimension_numbers = #tpu.dot_dimension_numbers<[1], [0], [0], [1], [0, 0, 1, 1], [], []>} : vector<8x128xbf16>, vector<128x128xbf16>, vector<8x128xf32> -> vector<8x128xf32>
    %c0_15 = arith.constant 0 : index
    %c0_16 = arith.constant 0 : index
    %19 = vector.load %arg8[%c0_15, %c0_16] : memref<1x128xf32, #tpu.memory_space<vmem>>, vector<1x128xf32>
    %20 = vector.broadcast %19 : vector<1x128xf32> to vector<8x128xf32>
    %21 = arith.addf %18, %20 : vector<8x128xf32>
    %cst_17 = arith.constant 0.000000e+00 : f32
    %22 = vector.broadcast %cst_17 : f32 to vector<8x128xf32>
    %23 = arith.subf %22, %21 : vector<8x128xf32>
    %24 = math.exp %23 : vector<8x128xf32>
    %cst_18 = arith.constant 1.000000e+00 : f32
    %25 = vector.broadcast %cst_18 : f32 to vector<8x128xf32>
    %26 = arith.addf %25, %24 : vector<8x128xf32>
    %27 = tpu.reciprocal %26 {approx = true} : vector<8x128xf32> -> vector<8x128xf32>
    %c0_19 = arith.constant 0 : index
    %c0_20 = arith.constant 0 : index
    %28 = vector.load %arg9[%c0_19, %c0_20] : memref<1x128xf32, #tpu.memory_space<vmem>>, vector<1x128xf32>
    %29 = vector.broadcast %28 : vector<1x128xf32> to vector<8x128xf32>
    %30 = arith.addf %27, %29 : vector<8x128xf32>
    %c0_21 = arith.constant 0 : index
    %c0_22 = arith.constant 0 : index
    %31 = vector.load %arg2[%c0_21, %c0_22] : memref<8x128xf32, #tpu.memory_space<vmem>>, vector<8x128xf32>
    %32 = arith.mulf %30, %31 : vector<8x128xf32>
    %c0_23 = arith.constant 0 : index
    %c0_24 = arith.constant 0 : index
    %33 = vector.load %arg10[%c0_23, %c0_24] : memref<8x128xf32, #tpu.memory_space<vmem>>, vector<8x128xf32>
    tpu.vector_store %arg10[%c0_23, %c0_24], %32 {strides = array<i32>} : memref<8x128xf32, #tpu.memory_space<vmem>>, vector<8x128xf32>,
    return
  }
  func.func @transform_0(%arg0: i32) -> (i32, i32) {
    %c0_i32 = arith.constant 0 : i32
    %c0_i32_0 = arith.constant 0 : i32
    return %arg0, %c0_i32 : i32, i32
  }
  func.func @transform_1(%arg0: i32) -> (i32, i32) {
    %c0_i32 = arith.constant 0 : i32
    %c0_i32_0 = arith.constant 0 : i32
    return %arg0, %c0_i32 : i32, i32
  }
  func.func @transform_2(%arg0: i32) -> (i32, i32) {
    %c0_i32 = arith.constant 0 : i32
    %c0_i32_0 = arith.constant 0 : i32
    %c0_i32_1 = arith.constant 0 : i32
    return %c0_i32, %c0_i32_0 : i32, i32
  }
  func.func @transform_3(%arg0: i32) -> (i32, i32) {
    %c0_i32 = arith.constant 0 : i32
    %c0_i32_0 = arith.constant 0 : i32
    %c0_i32_1 = arith.constant 0 : i32
    return %c0_i32, %c0_i32_0 : i32, i32
  }
  func.func @transform_4(%arg0: i32) -> (i32, i32) {
    %c0_i32 = arith.constant 0 : i32
    %c0_i32_0 = arith.constant 0 : i32
    %c0_i32_1 = arith.constant 0 : i32
    return %c0_i32, %c0_i32_0 : i32, i32
  }
  func.func @transform_5(%arg0: i32) -> (i32, i32) {
    %c0_i32 = arith.constant 0 : i32
    %c0_i32_0 = arith.constant 0 : i32
    %c0_i32_1 = arith.constant 0 : i32
    return %c0_i32, %c0_i32_0 : i32, i32
  }
  func.func @transform_6(%arg0: i32) -> (i32, i32) {
    %c0_i32 = arith.constant 0 : i32
    %c0_i32_0 = arith.constant 0 : i32
    %c0_i32_1 = arith.constant 0 : i32
    return %c0_i32, %c0_i32_0 : i32, i32
  }
  func.func @transform_7(%arg0: i32) -> (i32, i32) {
    %c0_i32 = arith.constant 0 : i32
    %c0_i32_0 = arith.constant 0 : i32
    %c0_i32_1 = arith.constant 0 : i32
    return %c0_i32, %c0_i32_0 : i32, i32
  }
  func.func @transform_8(%arg0: i32) -> (i32, i32) {
    %c0_i32 = arith.constant 0 : i32
    %c0_i32_0 = arith.constant 0 : i32
    %c0_i32_1 = arith.constant 0 : i32
    return %c0_i32, %c0_i32_0 : i32, i32
  }
  func.func @transform_9(%arg0: i32) -> (i32, i32) {
    %c0_i32 = arith.constant 0 : i32
    %c0_i32_0 = arith.constant 0 : i32
    return %arg0, %c0_i32 : i32, i32
  }
}

</mosaic_0001>

<bundles_post_ra>
// kernel: tpu_custom_call.1
= control target key start
LH: loop header
LB: loop body
LE: loop exit
PB: predicated region body
PF: predicated region fallthrough
CT: control target
= control target key end

     0   :  { %14 = vsyncpa [#allocation3], 0  ;;  %s879_s0 = inlined_call_operand.hbm [shape: bf16[8,128], index: 0, kind: input, shape index: {}]   ;;  %s880_s1 = inlined_call_operand.hbm [shape: f32[8,128], index: 1, kind: input, shape index: {}]   ;;  %s881_s2 = inlined_call_operand.hbm [shape: bf16[128,128], index: 2, kind: input, shape index: {}]   ;;  %s882_s3 = inlined_call_operand.vmem [shape: f32[1,128], index: 3, kind: input, shape index: {}]   ;;  %s883_s4 = inlined_call_operand.hbm [shape: bf16[128,128], index: 4, kind: input, shape index: {}]   ;;  %s884_s5 = inlined_call_operand.vmem [shape: f32[1,128], index: 5, kind: input, shape index: {}]   ;;  %s885_s6 = inlined_call_operand.hbm [shape: bf16[128,128], index: 6, kind: input, shape index: {}]   ;;  %s886_s7 = inlined_call_operand.vmem [shape: f32[1,128], index: 7, kind: input, shape index: {}]   ;;  %s887_s8 = inlined_call_operand.vmem [shape: f32[1,128], index: 8, kind: input, shape index: {}]   ;;  %s888_s9 = inlined_call_operand.hbm [shape: f32[8,128], index: 9, kind: output, shape index: {}]  }
   0x1   :  { %15 = vsyncpa [#allocation6], 0 }
   0x2   :  { %16 = vsyncpa [#allocation9], 0 }
   0x3   :  { %17 = vsyncpa [#allocation4], 0  ;;  %s750_s30 = smov [#allocation5]  }
   0x4   :  { %s34_s10 = sshll.u32 %s750_s30, 4  ;;  %s35_s10 = int_to_ptr.vmem [resolvable:$true] %s34_s10 }
   0x5   :  { %s630_s11 = scalar_lea.vmem %s35_s10, 128  ;;  %p635_p1 = scmp.lt.s32.totalorder %s35_s10, %s35_s10 }
   0x6   :  { %p631_p0 = scmp.ne.s32.totalorder %s35_s10, %s630_s11  ;;  %p636_p2 = scmp.lt.s32.totalorder %s630_s11, %s630_s11 }
   0x8   :  { %p637_p3 = por %p636_p2, %p635_p1 }
   0xa   :  { %p638_p4 = pnand %p637_p3, %p631_p0 }
   0xc   :  { %641 = shalt.err (!%p638_p4)
}
   0xd   :  { %37 = dma.hbm_to_vmem [thread:$0]  %s880_s1, 128, %s35_s10, [#allocation6]  }
   0xe   :  { %s751_s14 = smov [#allocation8]   ;;  %s752_s16 = smov [#allocation2]  }
   0xf   :  { %s57_s15 = sshll.u32 %s751_s14, 4  ;;  %s24_s17 = sshll.u32 %s752_s16, 4  ;;  %s58_s15 = int_to_ptr.vmem [resolvable:$true] %s57_s15  ;;  %s25_s17 = int_to_ptr.vmem [resolvable:$true] %s24_s17 }
  0x10   :  { %s650_s18 = scalar_lea.vmem %s58_s15, 1024  ;;  %p655_p6 = scmp.lt.s32.totalorder %s58_s15, %s58_s15 }
  0x11   :  { %p651_p5 = scmp.ne.s32.totalorder %s58_s15, %s650_s18  ;;  %p656_p7 = scmp.lt.s32.totalorder %s650_s18, %s650_s18 }
  0x13   :  { %p657_p8 = por %p656_p7, %p655_p6 }
  0x15   :  { %p658_p9 = pnand %p657_p8, %p651_p5 }
  0x17   :  { %661 = shalt.err (!%p658_p9)
}
  0x18   :  { %s753_s19 = smov 64   ;;  %s754_s20 = smov 4  }
  0x19   :  { %63 = dma.hbm_to_vmem [thread:$0]  %s883_s4, 1024, %s58_s15, [#allocation9], %s753_s19, %s753_s19, %s754_s20  }
  0x1a   :  { %s670_s1 = scalar_lea.vmem %s25_s17, 64  ;;  %p675_p11 = scmp.lt.s32.totalorder %s25_s17, %s25_s17 }
  0x1b   :  { %p671_p10 = scmp.ne.s32.totalorder %s25_s17, %s670_s1  ;;  %p676_p12 = scmp.lt.s32.totalorder %s670_s1, %s670_s1 }
  0x1d   :  { %p677_p13 = por %p676_p12, %p675_p11 }
  0x1f   :  { %p678_p0 = pnand %p677_p13, %p671_p10 }
  0x21   :  { %681 = shalt.err (!%p678_p0)
}
  0x22   :  { %27 = dma.hbm_to_vmem [thread:$0]  %s879_s0, 64, %s25_s17, [#allocation3]  }
  0x23   :  { %s755_s25 = smov [#allocation7]   ;;  %s756_s27 = smov [#allocation10]  }
  0x24   :  { %s43_s26 = sshll.u32 %s755_s25, 4  ;;  %s71_s28 = sshll.u32 %s756_s27, 4  ;;  %s44_s26 = int_to_ptr.vmem [resolvable:$true] %s43_s26  ;;  %s72_s28 = int_to_ptr.vmem [resolvable:$true] %s71_s28 }
  0x25   :  { %s690_s29 = scalar_lea.vmem %s44_s26, 1024  ;;  %p695_p2 = scmp.lt.s32.totalorder %s44_s26, %s44_s26 }
  0x26   :  { %p691_p1 = scmp.ne.s32.totalorder %s44_s26, %s690_s29  ;;  %p696_p3 = scmp.lt.s32.totalorder %s690_s29, %s690_s29 }
  0x28   :  { %p697_p4 = por %p696_p3, %p695_p2 }
  0x2a   :  { %p698_p5 = pnand %p697_p4, %p691_p1 }
  0x2c   :  { %701 = shalt.err (!%p698_p5)
}
  0x2d   :  { %49 = dma.hbm_to_vmem [thread:$0]  %s881_s2, 1024, %s44_s26, [#allocation6], %s753_s19, %s753_s19, %s754_s20  }
  0x2e   :  { %s710_s0 = scalar_lea.vmem %s72_s28, 1024  ;;  %p715_p7 = scmp.lt.s32.totalorder %s72_s28, %s72_s28 }
  0x2f   :  { %p711_p6 = scmp.ne.s32.totalorder %s72_s28, %s710_s0  ;;  %p716_p8 = scmp.lt.s32.totalorder %s710_s0, %s710_s0 }
  0x31   :  { %p717_p9 = por %p716_p8, %p715_p7 }
  0x33   :  { %p718_p10 = pnand %p717_p9, %p711_p6 }
  0x35   :  { %721 = shalt.err (!%p718_p10)
}
  0x36   :  { %77 = dma.hbm_to_vmem [thread:$0]  %s885_s6, 1024, %s72_s28, [#allocation9], %s753_s19, %s753_s19, %s754_s20  }
  0x37   :  { %742 = dma.done.wait [#allocation3], 64  }
  0x38   :  { %743 = vsyncadd [#allocation3], 4294967232 }
  0x39   :  { %744 = dma.done.wait [#allocation6], 1152  }
  0x3a   :  { %745 = vsyncadd [#allocation6], 4294966144 }
  0x3b   :  { %746 = dma.done.wait [#allocation9], 2048  }
  0x3c   :  { %747 = vsyncadd [#allocation9], 4294965248  ;;  %v757_v0 = vmov 0.0   ;;  %vm758_vm0 = vmmov 0   ;;  %v594_v1 = vld [vmem:[#allocation7 + $0x38] sm:$0xff]   ;;  %v595_v2 = vld [vmem:[#allocation7 + $0x30] sm:$0xff]  }
  0x3d   :  { %524 = vmatprep.subr.bf16.mxu0 %v757_v0  ;;  %540 = vmatprep.mubr.msk.bf16.mxu0 %vm758_vm0, %v757_v0  ;;  %v596_v3 = vld [vmem:[#allocation7 + $0x28] sm:$0xff]   ;;  %v602_v4 = vld [vmem:[#allocation8 + $0x38] sm:$0xff]   ;;  %v597_v5 = vld [vmem:[#allocation7 + $0x20] sm:$0xff]   ;;  %s759_s16 = smov [#allocation11]  }
  0x3e   :  { %544 = vmatprep.subr.bf16.mxu1 %v757_v0  ;;  %560 = vmatprep.mubr.msk.bf16.mxu1 %vm758_vm0, %v757_v0  ;;  %v603_v6 = vld [vmem:[#allocation8 + $0x30] sm:$0xff]   ;;  %v598_v7 = vld [vmem:[#allocation7 + $0x18] sm:$0xff]   ;;  %v604_v8 = vld [vmem:[#allocation8 + $0x28] sm:$0xff]   ;;  %s458_s17 = sshll.u32 %s759_s16, 4  ;;  %s459_s17 = int_to_ptr.vmem [resolvable:$true] %s458_s17 }
  0x3f   :  { %525 = vmatpush3.bf16.msra.mxu0 %v594_v1  ;;  %545 = vmatpush3.bf16.msra.mxu1 %v602_v4  ;;  %v599_v9 = vld [vmem:[#allocation7 + $0x10] sm:$0xff]   ;;  %v605_v10 = vld [vmem:[#allocation8 + $0x20] sm:$0xff]   ;;  %v600_v11 = vld [vmem:[#allocation7 + $0x8] sm:$0xff]   ;;  %p727_p12 = scmp.lt.s32.totalorder %s459_s17, %s459_s17 }
  0x40   :  { %526 = vmatprep.subr.bf16.mxu0 %v757_v0  ;;  %546 = vmatprep.subr.bf16.mxu1 %v757_v0  ;;  %v606_v12 = vld [vmem:[#allocation8 + $0x18] sm:$0xff]   ;;  %v601_v13 = vld [vmem:[#allocation7] sm:$0xff]   ;;  %v607_v14 = vld [vmem:[#allocation8 + $0x10] sm:$0xff]  }
  0x41   :  { %v98_v15 = vld [vmem:[#allocation2] sm:$0xf]  ;;  %v608_v16 = vld [vmem:[#allocation8 + $0x8] sm:$0xff]   ;;  %v609_v17 = vld [vmem:[#allocation8] sm:$0xff]  }
  0x42   :  { %v610_v18 = vld [vmem:[#allocation10 + $0x38] sm:$0xff]   ;;  %v611_v19 = vld [vmem:[#allocation10 + $0x30] sm:$0xff]   ;;  %v612_v20 = vld [vmem:[#allocation10 + $0x28] sm:$0xff]  }
  0x43   :  { %527 = vmatpush3.bf16.msra.mxu0 %v595_v2  ;;  %547 = vmatpush3.bf16.msra.mxu1 %v603_v6  ;;  %v613_v21 = vld [vmem:[#allocation10 + $0x20] sm:$0xff]   ;;  %v614_v22 = vld [vmem:[#allocation10 + $0x18] sm:$0xff]   ;;  %v615_v23 = vld [vmem:[#allocation10 + $0x10] sm:$0xff]  }
  0x44   :  { %528 = vmatprep.subr.bf16.mxu0 %v757_v0  ;;  %548 = vmatprep.subr.bf16.mxu1 %v757_v0  ;;  %v469_v24 = vld [vmem:[%s882_s3] ss:$0 sm:$0xff]  ;;  %v616_v32 = vld [vmem:[#allocation10 + $0x8] sm:$0xff]   ;;  %v617_v33 = vld [vmem:[#allocation10] sm:$0xff]  }
  0x45   :  { %v478_v34 = vld [vmem:[%s884_s5] ss:$0 sm:$0xff]  ;;  %v449_v54 = vld [vmem:[#allocation5] sm:$0xff] }
  0x46   :  { %v487_v42 = vld [vmem:[%s886_s7] ss:$0 sm:$0xff]  ;;  %s722_s7 = scalar_lea.vmem %s459_s17, 128 }
  0x47   :  { %529 = vmatpush3.bf16.msra.mxu0 %v596_v3  ;;  %549 = vmatpush3.bf16.msra.mxu1 %v604_v8  ;;  %v496_v52 = vld [vmem:[%s887_s8] ss:$0 sm:$0xff]  ;;  %p723_p11 = scmp.ne.s32.totalorder %s459_s17, %s722_s7  ;;  %p728_p13 = scmp.lt.s32.totalorder %s722_s7, %s722_s7 }
  0x48   :  { %530 = vmatprep.subr.bf16.mxu0 %v757_v0  ;;  %550 = vmatprep.subr.bf16.mxu1 %v757_v0 }
  0x49   :  { %p729_p0 = por %p728_p13, %p727_p12 }
  0x4b   :  { %531 = vmatpush3.bf16.msra.mxu0 %v597_v5  ;;  %551 = vmatpush3.bf16.msra.mxu1 %v605_v10  ;;  %p730_p1 = pnand %p729_p0, %p723_p11 }
  0x4c   :  { %532 = vmatprep.subr.bf16.mxu0 %v757_v0  ;;  %552 = vmatprep.subr.bf16.mxu1 %v757_v0 }
  0x4f   :  { %533 = vmatpush3.bf16.msra.mxu0 %v598_v7  ;;  %553 = vmatpush3.bf16.msra.mxu1 %v606_v12 }
  0x50   :  { %534 = vmatprep.subr.bf16.mxu0 %v757_v0  ;;  %554 = vmatprep.subr.bf16.mxu1 %v757_v0 }
  0x53   :  { %535 = vmatpush3.bf16.msra.mxu0 %v599_v9  ;;  %555 = vmatpush3.bf16.msra.mxu1 %v607_v14 }
  0x54   :  { %536 = vmatprep.subr.bf16.mxu0 %v757_v0  ;;  %556 = vmatprep.subr.bf16.mxu1 %v757_v0 }
  0x57   :  { %537 = vmatpush3.bf16.msra.mxu0 %v600_v11  ;;  %557 = vmatpush3.bf16.msra.mxu1 %v608_v16 }
  0x58   :  { %538 = vmatprep.subr.bf16.mxu0 %v757_v0  ;;  %558 = vmatprep.subr.bf16.mxu1 %v757_v0 }
  0x5b   :  { %539 = vmatpush3.bf16.msra.mxu0 %v601_v13  ;;  %559 = vmatpush3.bf16.msra.mxu1 %v609_v17 }
  0x5c   :  { %564 = vmatprep.subr.bf16.mxu0 %v757_v0 }
  0x5e   :  { %541 = vmatmul.mubr.bf16.vlgmr.msra.gmra.mxu0 %v98_v15 }
  0x5f   :  { %580 = vmatprep.mubr.msk.bf16.mxu0 %vm758_vm0, %v757_v0  ;;  %565 = vmatpush3.bf16.msra.mxu0 %v610_v18 }
  0x60   :  { %566 = vmatprep.subr.bf16.mxu0 %v757_v0 }
  0x63   :  { %567 = vmatpush3.bf16.msra.mxu0 %v611_v19 }
  0x64   :  { %568 = vmatprep.subr.bf16.mxu0 %v757_v0 }
  0x67   :  { %569 = vmatpush3.bf16.msra.mxu0 %v612_v20 }
  0x68   :  { %570 = vmatprep.subr.bf16.mxu0 %v757_v0 }
  0x6b   :  { %571 = vmatpush3.bf16.msra.mxu0 %v613_v21 }
  0x6c   :  { %572 = vmatprep.subr.bf16.mxu0 %v757_v0 }
  0x6f   :  { %573 = vmatpush3.bf16.msra.mxu0 %v614_v22 }
  0x70   :  { %574 = vmatprep.subr.bf16.mxu0 %v757_v0 }
  0x73   :  { %575 = vmatpush3.bf16.msra.mxu0 %v615_v23 }
  0x74   :  { %576 = vmatprep.subr.bf16.mxu0 %v757_v0 }
  0x77   :  { %577 = vmatpush3.bf16.msra.mxu0 %v616_v32 }
  0x78   :  { %578 = vmatprep.subr.bf16.mxu0 %v757_v0 }
  0x7b   :  { %579 = vmatpush3.bf16.msra.mxu0 %v617_v33 }
 0x11e   :  { %v204_v25 = vpop.f32.mrf.mxu0 }
 0x11f   :  { %v205_v26 = vadd.f32 %v469_v24, %v204_v25 }
 0x120   :  { %v542_v27 = vpop.f32.mrf.mxu0 }
 0x121   :  { %v210_v28 = vmax.f32 %v205_v26, 0.0 }
 0x122   :  { %v207_v29 = vpop.f32.mrf.mxu0 }
 0x123   :  { %v211_v30 = vpack.c.bf16 %v210_v28, %v210_v28 }
 0x124   :  { %v543_v31 = vpop.f32.mrf.mxu0 }
 0x125   :  { %561 = vmatmul.mubr.bf16.vlgmr.msra.gmra.mxu1 %v211_v30 }
 0x1e5   :  { %v317_v35 = vpop.f32.mrf.mxu1 }
 0x1e6   :  { %v318_v36 = vadd.f32 %v478_v34, %v317_v35 }
 0x1e7   :  { %v562_v37 = vpop.f32.mrf.mxu1 }
 0x1e8   :  { %v323_v38 = vmax.f32 %v318_v36, 0.0 }
 0x1e9   :  { %v320_v39 = vpop.f32.mrf.mxu1 }
 0x1ea   :  { %v324_v40 = vpack.c.bf16 %v323_v38, %v323_v38 }
 0x1eb   :  { %v563_v41 = vpop.f32.mrf.mxu1 }
 0x1ec   :  { %581 = vmatmul.mubr.bf16.vlgmr.msra.gmra.mxu0 %v324_v40 }
 0x2ac   :  { %v430_v43 = vpop.f32.mrf.mxu0 }
 0x2ad   :  { %v431_v44 = vadd.f32 %v487_v42, %v430_v43 }
 0x2ae   :  { %v582_v45 = vpop.f32.mrf.mxu0 }
 0x2af   :  { %v436_v46 = vsub.f32 0.0, %v431_v44 }
 0x2b0   :  { %v433_v47 = vpop.f32.mrf.mxu0 }
 0x2b1   :  { %v437_v48 = vmul.f32 1.442695, %v436_v46 }
 0x2b2   :  { %v583_v49 = vpop.f32.mrf.mxu0 }
 0x2b3   :  { %618 = vpow2.f32 %v437_v48 }
 0x2c0   :  { %v619_v50 = vpop.eup %618 }
 0x2c1   :  { %v439_v51 = vadd.f32 1.0, %v619_v50 }
 0x2c3   :  { %620 = vrcp.f32 %v439_v51 }
 0x2d0   :  { %v621_v53 = vpop.eup %620 }
 0x2d1   :  { %v448_v55 = vadd.f32 %v621_v53, %v496_v52 }
 0x2d3   :  { %v450_v56 = vmul.f32 %v449_v54, %v448_v55 }
 0x2d5   :  { %451 = vst [vmem:[#allocation11] sm:$0xff] %v450_v56 }
 0x2d6   :  { %733 = shalt.err (!%p730_p1)
}
 0x2d7   :  { %461 = dma.vmem_to_hbm [thread:$0]  %s459_s17, 128, %s888_s9, [#allocation4]  }
 0x2d8   :  { %748 = dma.done.wait [#allocation4], 128  }
 0x2d9   :  { %749 = vsyncadd [#allocation4], 4294967168 }
 0x2da   :  { %465 = vsyncpa [#allocation3], 1 }
 0x2db   :  { %466 = vsyncpa [#allocation6], 1 }
 0x2dc   :  { %467 = vsyncpa [#allocation9], 1 }
 0x2dd   :  { %468 = vsyncpa [#allocation4], 1 }

</bundles_post_ra>
